<compile_context>
chip_gen: v7x
topology: tpu7x:2x2x1
jax: 0.10.0
libtpu: 0.0.40
codegen_flags: <defaults>
</compile_context>

<pallas_src>
import functools

import jax
import jax.numpy as jnp
from jax.experimental import pallas as pl
from jax.experimental.pallas import tpu as pltpu

TM_PREF = 512                      # adj row-strip
TK_PREF = 1024                     # adj k-block
VMEM_LIMIT = 32 * 1024 * 1024      # safe scoped-VMEM on v5e/v6e/v7x
Z_RESIDENT_BYTES = 12 * 1024 * 1024  # budget (incl. double buffer) for resident Zs


def _round_up(x, m):
    return (x + m - 1) // m * m


def _choose_tiles(n):
    """(tm, tk, n_pad): tm,tk divide n_pad; n_pad//tm >= 2 whenever n > 128."""
    n128 = _round_up(max(n, 1), 128)
    if n128 <= 128:
        return 128, 128, 128
    if n128 <= 256:
        return 128, 256, 256
    n_pad = _round_up(n128, 512)
    tm = 512 if n_pad >= 1024 else 256
    tk = 1024 if n_pad % 1024 == 0 else 512
    return tm, tk, n_pad


def _compiler_params(semantics):
    return pltpu.CompilerParams(dimension_semantics=semantics,
                                vmem_limit_bytes=VMEM_LIMIT)


# --------------------------- kernel bodies ---------------------------

def _degree_kernel(adj_ref, dinv_ref, acc_ref):
    """dinv[i] = rsqrt( sum_j adjI[i, j] ); adjI = A + I (self-loop pre-folded)."""
    k = pl.program_id(1)

    @pl.when(k == 0)
    def _():
        acc_ref[...] = jnp.zeros_like(acc_ref)

    acc_ref[...] += jnp.sum(adj_ref[...].astype(jnp.float32), axis=1, keepdims=True)

    @pl.when(k == pl.num_programs(1) - 1)
    def _():
        dinv_ref[...] = jax.lax.rsqrt(jnp.maximum(acc_ref[...], 1.0))


def _transform_kernel(x_ref, w_ref, dinv_ref, z_ref):
    """Zs = dinv * (X @ W) in bf16 (bf16 x bf16 MXU, f32 accumulate)."""
    z = jnp.dot(x_ref[...], w_ref[...], preferred_element_type=jnp.float32)
    z_ref[...] = (dinv_ref[...] * z).astype(z_ref.dtype)


def _propagate_relu_kernel(adj_ref, z_ref, dinv_ref, b_ref, out_ref, acc_ref,
                           *, tk, resident):
    """H = relu( dinv * (adjI @ Zs) + b )  ==  relu( A_norm @ (X W) + b )."""
    k = pl.program_id(1)

    @pl.when(k == 0)
    def _():
        acc_ref[...] = jnp.zeros_like(acc_ref)

    if resident:
        zk = z_ref[pl.ds(pl.multiple_of(k * tk, 128), tk), :]
    else:
        zk = z_ref[...]
    acc_ref[...] += jnp.dot(adj_ref[...].astype(jnp.bfloat16), zk,
                            preferred_element_type=jnp.float32)

    @pl.when(k == pl.num_programs(1) - 1)
    def _():
        h = dinv_ref[...] * acc_ref[...] + b_ref[...]
        out_ref[...] = jnp.maximum(h, 0.0).astype(out_ref.dtype)


def _propagate_output_kernel(adj_ref, z_ref, dinv_ref, b2_ref, wo_ref, bo_ref,
                             out_ref, acc_ref, *, tk, resident, nclass):
    """out = log_softmax( (A_norm @ (H1 W2) + b2) @ Wo + bo , dim=1 )."""
    k = pl.program_id(1)

    @pl.when(k == 0)
    def _():
        acc_ref[...] = jnp.zeros_like(acc_ref)

    if resident:
        zk = z_ref[pl.ds(pl.multiple_of(k * tk, 128), tk), :]
    else:
        zk = z_ref[...]
    acc_ref[...] += jnp.dot(adj_ref[...].astype(jnp.bfloat16), zk,
                            preferred_element_type=jnp.float32)

    @pl.when(k == pl.num_programs(1) - 1)
    def _():
        h2 = dinv_ref[...] * acc_ref[...] + b2_ref[...]
        logits = jnp.dot(h2.astype(jnp.bfloat16), wo_ref[...],
                         preferred_element_type=jnp.float32) + bo_ref[...]
        # mask padded class lanes (kept in f32; -1e30 would overflow bf16)
        col = jax.lax.broadcasted_iota(jnp.int32, logits.shape, 1)
        logits = jnp.where(col < nclass, logits, -1e30)
        m = jnp.max(logits, axis=1, keepdims=True)
        lse = jnp.log(jnp.sum(jnp.exp(logits - m), axis=1, keepdims=True)) + m
        out_ref[...] = (logits - lse).astype(out_ref.dtype)


# ----------------------------- wrappers -----------------------------

@functools.partial(jax.jit, static_argnums=(1,))
def gcn_prepare(adj, n_pad):
    """One-time (per graph) preprocessing.

    Pads adj to (n_pad, n_pad) int8, folds the self-loop in (diag := 1, i.e.
    A + I; precondition: adj has zero diagonal) and computes
    dinv = rsqrt(rowsum(A + I)).  Hoisted out of the per-call forward so a
    static graph never re-pays the O(N^2) pad/cast/degree traffic.
    """
    n = adj.shape[0]
    tm, tk, n_pad2 = _choose_tiles(n_pad)
    assert n_pad2 == n_pad, "n_pad must come from _choose_tiles"

    adj_i8 = jnp.zeros((n_pad, n_pad), jnp.int8).at[:n, :n].set(adj.astype(jnp.int8))
    idx = jnp.arange(n_pad)
    adj_i8 = adj_i8.at[idx, idx].set(1)          # fold self-loop (A + I)

    dinv = pl.pallas_call(
        _degree_kernel,
        out_shape=jax.ShapeDtypeStruct((n_pad, 1), jnp.float32),
        grid=(n_pad // tm, n_pad // tk),
        in_specs=[pl.BlockSpec((tm, tk), lambda i, k: (i, k))],
        out_specs=pl.BlockSpec((tm, 1), lambda i, k: (i, 0)),
        scratch_shapes=[pltpu.VMEM((tm, 1), jnp.float32)],
        compiler_params=_compiler_params(("parallel", "arbitrary")),
    )(adj_i8)
    return adj_i8, dinv


@jax.jit
def gcn_forward_prepared(adj_p, dinv, x, w1, b1, w2, b2, wo, bo):
    """GCN inference forward on a prepared graph; returns (N, nclass) log-probs."""
    n_pad = adj_p.shape[0]
    n, nfeat = x.shape
    nhid, nhid1, nclass = w1.shape[1], w2.shape[1], wo.shape[1]

    h_pad = _round_up(nhid, 128)
    h1_pad = _round_up(nhid1, 128)
    c_pad = _round_up(nclass, 128)

    tm, tk, n_pad2 = _choose_tiles(n_pad)
    assert n_pad2 == n_pad, "adj_p must be produced by gcn_prepare"
    grid2 = (n_pad // tm, n_pad // tk)

    # Keep Zs fully VMEM-resident in the propagation kernels when it fits
    # (2x for potential double-buffering); otherwise stream per k-block.
    z_resident = 2 * n_pad * max(h_pad, h1_pad) * 2 <= Z_RESIDENT_BYTES

    def z_spec(h_dim):
        if z_resident:
            return pl.BlockSpec((n_pad, h_dim), lambda i, k: (0, 0))
        return pl.BlockSpec((tk, h_dim), lambda i, k: (k, 0))

    # --- small operand padding (O(N*F), cheap) ---
    x_p = jnp.zeros((n_pad, nfeat), jnp.bfloat16).at[:n, :].set(x.astype(jnp.bfloat16))
    w1_p = jnp.zeros((nfeat, h_pad), jnp.bfloat16).at[:, :nhid].set(w1.astype(jnp.bfloat16))
    b1_p = jnp.zeros((1, h_pad), jnp.float32).at[:, :nhid].set(b1)
    w2_p = jnp.zeros((h_pad, h1_pad), jnp.bfloat16).at[:nhid, :nhid1].set(w2.astype(jnp.bfloat16))
    b2_p = jnp.zeros((1, h1_pad), jnp.float32).at[:, :nhid1].set(b2)
    wo_p = jnp.zeros((h1_pad, c_pad), jnp.bfloat16).at[:nhid1, :nclass].set(wo.astype(jnp.bfloat16))
    bo_p = jnp.zeros((1, c_pad), jnp.float32).at[:, :nclass].set(bo)

    def transform(feat, w, out_dim):
        f = feat.shape[1]
        return pl.pallas_call(
            _transform_kernel,
            out_shape=jax.ShapeDtypeStruct((n_pad, out_dim), jnp.bfloat16),
            grid=(n_pad // tm,),
            in_specs=[pl.BlockSpec((tm, f), lambda i: (i, 0)),
                      pl.BlockSpec((f, out_dim), lambda i: (0, 0)),
                      pl.BlockSpec((tm, 1), lambda i: (i, 0))],
            out_specs=pl.BlockSpec((tm, out_dim), lambda i: (i, 0)),
            compiler_params=_compiler_params(("parallel",)),
        )(feat, w, dinv)

    # --- conv1: relu(A_norm @ (X W1) + b1) ---
    z1 = transform(x_p, w1_p, h_pad)                    # dinv * (X @ W1), bf16
    h1 = pl.pallas_call(
        functools.partial(_propagate_relu_kernel, tk=tk, resident=z_resident),
        out_shape=jax.ShapeDtypeStruct((n_pad, h_pad), jnp.bfloat16),
        grid=grid2,
        in_specs=[pl.BlockSpec((tm, tk), lambda i, k: (i, k)),
                  z_spec(h_pad),
                  pl.BlockSpec((tm, 1), lambda i, k: (i, 0)),
                  pl.BlockSpec((1, h_pad), lambda i, k: (0, 0))],
        out_specs=pl.BlockSpec((tm, h_pad), lambda i, k: (i, 0)),
        scratch_shapes=[pltpu.VMEM((tm, h_pad), jnp.float32)],
        compiler_params=_compiler_params(("parallel", "arbitrary")),
    )(adj_p, z1, dinv, b1_p)
    # dropout(training=False) -> identity

    # --- conv2 + output Linear + log_softmax, fused epilogue ---
    z2 = transform(h1, w2_p, h1_pad)                    # dinv * (H1 @ W2), bf16
    out_p = pl.pallas_call(
        functools.partial(_propagate_output_kernel, tk=tk, resident=z_resident,
                          nclass=nclass),
        out_shape=jax.ShapeDtypeStruct((n_pad, c_pad), jnp.float32),
        grid=grid2,
        in_specs=[pl.BlockSpec((tm, tk), lambda i, k: (i, k)),
                  z_spec(h1_pad),
                  pl.BlockSpec((tm, 1), lambda i, k: (i, 0)),
                  pl.BlockSpec((1, h1_pad), lambda i, k: (0, 0)),
                  pl.BlockSpec((h1_pad, c_pad), lambda i, k: (0, 0)),
                  pl.BlockSpec((1, c_pad), lambda i, k: (0, 0))],
        out_specs=pl.BlockSpec((tm, c_pad), lambda i, k: (i, 0)),
        scratch_shapes=[pltpu.VMEM((tm, h1_pad), jnp.float32)],
        compiler_params=_compiler_params(("parallel", "arbitrary")),
    )(adj_p, z2, dinv, b2_p, wo_p, bo_p)

    return out_p[:n, :nclass]


def gcn_forward(adj, x, w1, b1, w2, b2, wo, bo):
    """Convenience wrapper: prepare (pad + self-loop + degree) then forward."""
    _, _, n_pad = _choose_tiles(adj.shape[0])
    adj_p, dinv = gcn_prepare(adj, n_pad)
    return gcn_forward_prepared(adj_p, dinv, x, w1, b1, w2, b2, wo, bo)


# ------------------------- reference & params -------------------------

def gcn_reference(adj, x, w1, b1, w2, b2, wo, bo):
    """Dense f32 reference of the same forward pass (for validation only)."""
    n = adj.shape[0]
    a_hat = adj + jnp.eye(n, dtype=adj.dtype)
    dinv = jax.lax.rsqrt(jnp.sum(a_hat, axis=1, keepdims=True))
    a_norm = dinv * a_hat * dinv.T
    h1 = jnp.maximum(a_norm @ (x @ w1) + b1, 0.0)
    h2 = a_norm @ (h1 @ w2) + b2
    logits = h2 @ wo + bo
    return jax.nn.log_softmax(logits, axis=1)


def init_params(key, nfeat, nhid, nhid1, nclass):
    """Deterministic synthetic parameters for GCN(nfeat, nhid, nhid1, nclass)."""
    ks = jax.random.split(key, 6)
    scale = 0.1
    w1 = scale * jax.random.normal(ks[0], (nfeat, nhid), jnp.float32)
    b1 = scale * jax.random.normal(ks[1], (1, nhid), jnp.float32)
    w2 = scale * jax.random.normal(ks[2], (nhid, nhid1), jnp.float32)
    b2 = scale * jax.random.normal(ks[3], (1, nhid1), jnp.float32)
    wo = scale * jax.random.normal(ks[4], (nhid1, nclass), jnp.float32)
    bo = scale * jax.random.normal(ks[5], (1, nclass), jnp.float32)
    return w1, b1, w2, b2, wo, bo


if __name__ == "__main__":
    key = jax.random.PRNGKey(0)
    k_adj, k_x, k_par = jax.random.split(key, 3)

    N, NFEAT, NHID, NHID1, NCLASS = 200, 48, 32, 16, 7

    # symmetric 0/1 adjacency with zero diagonal (undirected graph)
    a = (jax.random.uniform(k_adj, (N, N)) > 0.85).astype(jnp.float32)
    adj = jnp.clip(a + a.T, 0.0, 1.0)
    adj = adj * (1.0 - jnp.eye(N, dtype=jnp.float32))

    x = jax.random.normal(k_x, (N, NFEAT), jnp.float32)
    params = init_params(k_par, NFEAT, NHID, NHID1, NCLASS)

    out = gcn_forward(adj, x, *params)
    jax.block_until_ready(out)

    assert out.shape == (N, NCLASS)
    # log_softmax rows must sum to 1 in prob space
    assert bool(jnp.all(jnp.abs(jnp.sum(jnp.exp(out), axis=1) - 1.0) < 1e-3))
    # must match the dense f32 reference (bf16 propagation tolerance)
    ref = gcn_reference(adj, x, *params)
    assert bool(jnp.max(jnp.abs(out - ref)) < 5e-2)

    print("KERNEL_OK")
</pallas_src>

<mosaic_0001>
module attributes {stable_mosaic.version = 11 : i64} {
  func.func @_degree_kernel(%arg0: i32, %arg1: i32, %arg2: memref<128x256xi8, #tpu.memory_space<vmem>>, %arg3: memref<128x1xf32, #tpu.memory_space<vmem>>, %arg4: memref<128x1xf32, #tpu.memory_space<vmem>>) attributes {dimension_semantics = [#tpu.dimension_semantics<parallel>, #tpu.dimension_semantics<arbitrary>], iteration_bounds = array<i64: 2, 1>, scalar_prefetch = 0 : i64, scratch_operands = 1 : i64, tpu.core_type = #tpu.core_type<tc>, window_params = [{transform_indices = @transform_0, window_bounds = array<i64: 128, 256>}, {transform_indices = @transform_1, window_bounds = array<i64: 128, 1>}]} {
    %c0_i32 = arith.constant 0 : i32
    %0 = arith.cmpi eq, %arg1, %c0_i32 : i32
    %1 = arith.extui %0 : i1 to i32
    %c0_i32_0 = arith.constant 0 : i32
    %2 = arith.cmpi ne, %1, %c0_i32_0 : i32
    scf.if %2 {
      %cst_8 = arith.constant 0.000000e+00 : f32
      %13 = vector.broadcast %cst_8 : f32 to vector<128x1xf32>
      %c0_9 = arith.constant 0 : index
      %c0_10 = arith.constant 0 : index
      %14 = vector.load %arg4[%c0_9, %c0_10] : memref<128x1xf32, #tpu.memory_space<vmem>>, vector<128x1xf32>
      tpu.vector_store %arg4[%c0_9, %c0_10], %13 {strides = array<i32>} : memref<128x1xf32, #tpu.memory_space<vmem>>, vector<128x1xf32>,
    } else {
    }
    %c0 = arith.constant 0 : index
    %c0_1 = arith.constant 0 : index
    %3 = vector.load %arg4[%c0, %c0_1] : memref<128x1xf32, #tpu.memory_space<vmem>>, vector<128x1xf32>
    %c0_2 = arith.constant 0 : index
    %c0_3 = arith.constant 0 : index
    %4 = vector.load %arg2[%c0_2, %c0_3] : memref<128x256xi8, #tpu.memory_space<vmem>>, vector<128x256xi8>
    %5 = arith.sitofp %4 : vector<128x256xi8> to vector<128x256xf32>
    %cst = arith.constant dense<0.000000e+00> : vector<128xf32>
    %6 = vector.multi_reduction <add>, %5, %cst [1] : vector<128x256xf32> to vector<128xf32>
    %7 = vector.shape_cast %6 : vector<128xf32> to vector<128x1xf32>
    %8 = arith.addf %3, %7 : vector<128x1xf32>
    %c0_4 = arith.constant 0 : index
    %c0_5 = arith.constant 0 : index
    %9 = vector.load %arg4[%c0_4, %c0_5] : memref<128x1xf32, #tpu.memory_space<vmem>>, vector<128x1xf32>
    tpu.vector_store %arg4[%c0_4, %c0_5], %8 {strides = array<i32>} : memref<128x1xf32, #tpu.memory_space<vmem>>, vector<128x1xf32>,
    %c0_i32_6 = arith.constant 0 : i32
    %10 = arith.cmpi eq, %arg1, %c0_i32_6 : i32
    %11 = arith.extui %10 : i1 to i32
    %c0_i32_7 = arith.constant 0 : i32
    %12 = arith.cmpi ne, %11, %c0_i32_7 : i32
    scf.if %12 {
      %c0_8 = arith.constant 0 : index
      %c0_9 = arith.constant 0 : index
      %13 = vector.load %arg4[%c0_8, %c0_9] : memref<128x1xf32, #tpu.memory_space<vmem>>, vector<128x1xf32>
      %cst_10 = arith.constant 1.000000e+00 : f32
      %14 = vector.broadcast %cst_10 : f32 to vector<128x1xf32>
      %15 = arith.maximumf %13, %14 : vector<128x1xf32>
      %16 = math.rsqrt %15 : vector<128x1xf32>
      %c0_11 = arith.constant 0 : index
      %c0_12 = arith.constant 0 : index
      %17 = vector.load %arg3[%c0_11, %c0_12] : memref<128x1xf32, #tpu.memory_space<vmem>>, vector<128x1xf32>
      tpu.vector_store %arg3[%c0_11, %c0_12], %16 {strides = array<i32>} : memref<128x1xf32, #tpu.memory_space<vmem>>, vector<128x1xf32>,
    } else {
    }
    return
  }
  func.func @transform_0(%arg0: i32, %arg1: i32) -> (i32, i32) {
    %c0_i32 = arith.constant 0 : i32
    return %arg0, %arg1 : i32, i32
  }
  func.func @transform_1(%arg0: i32, %arg1: i32) -> (i32, i32) {
    %c0_i32 = arith.constant 0 : i32
    %c0_i32_0 = arith.constant 0 : i32
    return %arg0, %c0_i32 : i32, i32
  }
}

</mosaic_0001>

<bundles_post_ra>
// kernel: gcn_prepare.1
= control target key start
LH: loop header
LB: loop body
LE: loop exit
PB: predicated region body
PF: predicated region fallthrough
CT: control target
= control target key end

     0   :  { %s647_s6 = smov 0   ;;  %s649_s7 = smov 0   ;;  %s769_s0 = inlined_call_operand.vmem [shape: s8[256,256], index: 0, kind: input, shape index: {}]   ;;  %s770_s1 = inlined_call_operand.vmem [shape: f32[256,1], index: 1, kind: output, shape index: {}]  }
   0x1   :  { %s651_s8 = smov 0  }
   0x2 LB: > { %s23_s9 = sadd.s32 1, %s630_s7  ;;  %p491_p0 = scmp.ge.s32.totalorder %s634_s8, 1  ;;  %s634_s8 = sphi %s651_s8, %s11_s8   ;;  %s630_s7 = sphi %s649_s7, %s773_s7   ;;  %s626_s6 = sphi %s647_s6, %s772_s6  }
   0x3   : > { %p25_p1 = scmp.ge.s32.totalorder %s23_s9, 2  ;;  %p108_p2 = scmp.lt.s32.totalorder %s634_s8, 3 }
   0x5   : > { %s775_s9 = smov (%p25_p1, %s23_s9), 0  ;;  %p109_p3 = pnand %p491_p0, %p108_p2 }
   0x6   : > { %s492_s10 = sshll.u32 (!%p109_p3), %s626_s6, 4  ;;  %vm155_vm0 = vcmask (!%p109_p3), 7168   ;;  %v636_v0 = vmov (!%p109_p3), 0.0  }
   0x7   : > { %112 = sbr.rel (%p109_p3) target bundleno = 219 (0xdb), region = 24  ;;  %p668_p4 = scmp.lt.s32.totalorder (!%p109_p3), %s492_s10, 31  ;;  %158 = vst.msk [vmem:[#allocation2 + $0x10] sm:$0xff] (!%p109_p3), %vm155_vm0, %v636_v0  ;;  %156 = vst.msk [vmem:[#allocation2] sm:$0xff] (!%p109_p3), %vm155_vm0, %v636_v0 }
   0x8   : > { %157 = vst.msk [vmem:[#allocation2 + $0x8] sm:$0xff] (!%p109_p3), %vm155_vm0, %v636_v0  ;;  %159 = vst.msk [vmem:[#allocation2 + $0x18] sm:$0xff] (!%p109_p3), %vm155_vm0, %v636_v0 }
   0x9   : > { %160 = vst.msk [vmem:[#allocation2 + $0x20] sm:$0xff] (!%p109_p3), %vm155_vm0, %v636_v0  ;;  %161 = vst.msk [vmem:[#allocation2 + $0x28] sm:$0xff] (!%p109_p3), %vm155_vm0, %v636_v0 }
   0xa   : > { %162 = vst.msk [vmem:[#allocation2 + $0x30] sm:$0xff] (!%p109_p3), %vm155_vm0, %v636_v0  ;;  %163 = vst.msk [vmem:[#allocation2 + $0x38] sm:$0xff] (!%p109_p3), %vm155_vm0, %v636_v0 }
   0xb   : > { %164 = vst.msk [vmem:[#allocation2 + $0x40] sm:$0xff] (!%p109_p3), %vm155_vm0, %v636_v0  ;;  %165 = vst.msk [vmem:[#allocation2 + $0x48] sm:$0xff] (!%p109_p3), %vm155_vm0, %v636_v0 }
   0xc   : > { %166 = vst.msk [vmem:[#allocation2 + $0x50] sm:$0xff] (!%p109_p3), %vm155_vm0, %v636_v0  ;;  %167 = vst.msk [vmem:[#allocation2 + $0x58] sm:$0xff] (!%p109_p3), %vm155_vm0, %v636_v0 }
   0xd   : > { %168 = vst.msk [vmem:[#allocation2 + $0x60] sm:$0xff] (!%p109_p3), %vm155_vm0, %v636_v0  ;;  %169 = vst.msk [vmem:[#allocation2 + $0x68] sm:$0xff] (!%p109_p3), %vm155_vm0, %v636_v0 }
   0xe   : > { %170 = vst.msk [vmem:[#allocation2 + $0x70] sm:$0xff] %vm155_vm0, %v636_v0  ;;  %171 = vst.msk [vmem:[#allocation2 + $0x78] sm:$0xff] %vm155_vm0, %v636_v0  ;;  %s777_s10 = smov (!%p668_p4, %s492_s10), 31 }
   0xf   : > { %s499_s12 = sshll.u32 %s777_s10, 2  ;;  %s496_s16 = sshll.u32 %s777_s10, 3 }
  0x10   : > { %s696_s15 = scalar_lea.vmem %s769_s0, %s499_s12  ;;  %s720_s19 = scalar_lea.vmem %s770_s1, %s496_s16 }
  0x11   : > { %v548_v1 = vld [vmem:[%s696_s15 + $0x8] sm:$0xff]   ;;  %v501_v2 = vld [vmem:[%s696_s15] sm:$0xff]   ;;  %v549_v11 = vld [vmem:[%s696_s15 + $0x10] sm:$0xff]  }
  0x12   : > { %v508_v3 = vunpack.c.0.s8 %v548_v1  ;;  %v509_v4 = vunpack.c.1.s8 %v548_v1  ;;  %v502_v5 = vunpack.c.0.s8 %v501_v2  ;;  %v503_v6 = vunpack.c.1.s8 %v501_v2  ;;  %v550_v20 = vld [vmem:[%s696_s15 + $0x18] sm:$0xff]   ;;  %v551_v33 = vld [vmem:[%s696_s15 + $0x20] sm:$0xff]   ;;  %v552_v44 = vld [vmem:[%s696_s15 + $0x28] sm:$0xff]  }
  0x13   : > { %v510_v7 = vunpack.c.2.s8 %v548_v1  ;;  %v511_v8 = vunpack.c.3.s8 %v548_v1  ;;  %v504_v9 = vunpack.c.2.s8 %v501_v2  ;;  %v505_v10 = vunpack.c.3.s8 %v501_v2  ;;  %v553_v55 = vld [vmem:[%s696_s15 + $0x30] sm:$0xff]  }
  0x14   : > { %v240_v12 = vcvt.s32.f32 %v508_v3  ;;  %v241_v13 = vcvt.s32.f32 %v509_v4  ;;  %v236_v14 = vcvt.s32.f32 %v502_v5  ;;  %v237_v15 = vcvt.s32.f32 %v503_v6  ;;  %v554_v6 = vld [vmem:[%s696_s15 + $0x38] sm:$0xff]  }
  0x15   : > { %v242_v16 = vcvt.s32.f32 %v510_v7  ;;  %v243_v17 = vcvt.s32.f32 %v511_v8  ;;  %v238_v18 = vcvt.s32.f32 %v504_v9  ;;  %v239_v19 = vcvt.s32.f32 %v505_v10 }
  0x16   : > { %v274_v21 = vadd.f32 %v241_v13, %v240_v12  ;;  %v268_v22 = vadd.f32 %v237_v15, %v236_v14  ;;  %v516_v23 = vunpack.c.2.s8 %v549_v11  ;;  %v517_v24 = vunpack.c.3.s8 %v549_v11 }
  0x17   : > { %v277_v25 = vadd.f32 %v243_v17, %v242_v16  ;;  %v271_v26 = vadd.f32 %v239_v19, %v238_v18  ;;  %v514_v27 = vunpack.c.0.s8 %v549_v11  ;;  %v515_v28 = vunpack.c.1.s8 %v549_v11 }
  0x18   : > { %275 = vadd.xlane.f32.xlu1 %v274_v21  ;;  %269 = vadd.xlane.f32.xlu0 %v268_v22  ;;  %v246_v29 = vcvt.s32.f32 %v516_v23  ;;  %v247_v30 = vcvt.s32.f32 %v517_v24  ;;  %v522_v31 = vunpack.c.2.s8 %v550_v20  ;;  %v523_v32 = vunpack.c.3.s8 %v550_v20 }
  0x19   : > { %v244_v34 = vcvt.s32.f32 %v514_v27  ;;  %v245_v35 = vcvt.s32.f32 %v515_v28  ;;  %v520_v36 = vunpack.c.0.s8 %v550_v20  ;;  %v521_v37 = vunpack.c.1.s8 %v550_v20 }
  0x1a   : > { %v283_v38 = vadd.f32 %v247_v30, %v246_v29  ;;  %v250_v39 = vcvt.s32.f32 %v522_v31  ;;  %v251_v41 = vcvt.s32.f32 %v523_v32  ;;  %v528_v43 = vunpack.c.2.s8 %v551_v33  ;;  %v175_v31 = vld [vmem:[#allocation2 + $0x18] sm:$0xff]  ;;  %v173_v32 = vld [vmem:[#allocation2 + $0x8] sm:$0xff] }
  0x1b   : > { %v280_v40 = vadd.f32 %v245_v35, %v244_v34  ;;  %v248_v42 = vcvt.s32.f32 %v520_v36  ;;  %v249_v45 = vcvt.s32.f32 %v521_v37  ;;  %v529_v46 = vunpack.c.3.s8 %v551_v33  ;;  %v177_v37 = vld [vmem:[#allocation2 + $0x28] sm:$0xff] }
  0x1c   : > { %278 = vadd.xlane.f32.xlu1 %v277_v25  ;;  %272 = vadd.xlane.f32.xlu0 %v271_v26  ;;  %v526_v47 = vunpack.c.0.s8 %v551_v33  ;;  %v527_v48 = vunpack.c.1.s8 %v551_v33  ;;  %v534_v49 = vunpack.c.2.s8 %v552_v44  ;;  %v535_v50 = vunpack.c.3.s8 %v552_v44  ;;  %v174_v25 = vld [vmem:[#allocation2 + $0x10] sm:$0xff]  ;;  %v172_v26 = vld [vmem:[#allocation2] sm:$0xff] }
  0x1d   : > { %v289_v51 = vadd.f32 %v251_v41, %v250_v39  ;;  %v254_v52 = vcvt.s32.f32 %v528_v43  ;;  %v532_v53 = vunpack.c.0.s8 %v552_v44  ;;  %v533_v54 = vunpack.c.1.s8 %v552_v44  ;;  %v179_v43 = vld [vmem:[#allocation2 + $0x38] sm:$0xff] }
  0x1e   : > { %v286_v56 = vadd.f32 %v249_v45, %v248_v42  ;;  %v255_v57 = vcvt.s32.f32 %v529_v46  ;;  %v252_v58 = vcvt.s32.f32 %v526_v47  ;;  %v253_v59 = vcvt.s32.f32 %v527_v48  ;;  %v178_v46 = vld [vmem:[#allocation2 + $0x30] sm:$0xff] }
  0x1f   : > { %v258_v60 = vcvt.s32.f32 %v534_v49  ;;  %v259_v61 = vcvt.s32.f32 %v535_v50  ;;  %v540_v62 = vunpack.c.2.s8 %v553_v55  ;;  %v256_v63 = vcvt.s32.f32 %v532_v53  ;;  %v181_v53 = vld [vmem:[#allocation2 + $0x48] sm:$0xff] }
  0x20   : > { %284 = vadd.xlane.f32.xlu1 %v283_v38  ;;  %281 = vadd.xlane.f32.xlu0 %v280_v40  ;;  %v257_v0 = vcvt.s32.f32 %v533_v54  ;;  %v541_v1 = vunpack.c.3.s8 %v553_v55  ;;  %v295_v2 = vadd.f32 %v255_v57, %v254_v52  ;;  %v292_v3 = vadd.f32 %v253_v59, %v252_v58  ;;  %v176_v38 = vld [vmem:[#allocation2 + $0x20] sm:$0xff] }
  0x21   : > { %v538_v4 = vunpack.c.0.s8 %v553_v55  ;;  %v539_v5 = vunpack.c.1.s8 %v553_v55  ;;  %v301_v7 = vadd.f32 %v259_v61, %v258_v60  ;;  %v262_v8 = vcvt.s32.f32 %v540_v62 }
  0x22   : > { %v298_v9 = vadd.f32 %v257_v0, %v256_v63  ;;  %v263_v10 = vcvt.s32.f32 %v541_v1  ;;  %v546_v11 = vunpack.c.2.s8 %v554_v6  ;;  %v547_v12 = vunpack.c.3.s8 %v554_v6  ;;  %v183_v63 = vld [vmem:[#allocation2 + $0x58] sm:$0xff] }
  0x23   : > { %v260_v13 = vcvt.s32.f32 %v538_v4  ;;  %v261_v14 = vcvt.s32.f32 %v539_v5  ;;  %v544_v15 = vunpack.c.0.s8 %v554_v6  ;;  %v545_v16 = vunpack.c.1.s8 %v554_v6 }
  0x24   : > { %290 = vadd.xlane.f32.xlu1 %v289_v51  ;;  %287 = vadd.xlane.f32.xlu0 %v286_v56  ;;  %v307_v17 = vadd.f32 %v263_v10, %v262_v8  ;;  %v266_v18 = vcvt.s32.f32 %v546_v11  ;;  %v267_v20 = vcvt.s32.f32 %v547_v12  ;;  %v180_v56 = vld [vmem:[#allocation2 + $0x40] sm:$0xff] }
  0x25   : > { %v304_v19 = vadd.f32 %v261_v14, %v260_v13  ;;  %v264_v21 = vcvt.s32.f32 %v544_v15  ;;  %v265_v22 = vcvt.s32.f32 %v545_v16  ;;  %v184_v12 = vld [vmem:[#allocation2 + $0x60] sm:$0xff] }
  0x26   : > { %v313_v23 = vadd.f32 %v267_v20, %v266_v18 }
  0x27   : > { %v310_v24 = vadd.f32 %v265_v22, %v264_v21  ;;  %v187_v21 = vld [vmem:[#allocation2 + $0x78] sm:$0xff] }
  0x28   : > { %296 = vadd.xlane.f32.xlu1 %v295_v2  ;;  %293 = vadd.xlane.f32.xlu0 %v292_v3  ;;  %v182_v2 = vld [vmem:[#allocation2 + $0x50] sm:$0xff] }
  0x2c   : > { %302 = vadd.xlane.f32.xlu1 %v301_v7  ;;  %299 = vadd.xlane.f32.xlu0 %v298_v9  ;;  %v185_v9 = vld [vmem:[#allocation2 + $0x68] sm:$0xff] }
  0x30   : > { %308 = vadd.xlane.f32.xlu1 %v307_v17  ;;  %305 = vadd.xlane.f32.xlu0 %v304_v19 }
  0x34   : > { %314 = vadd.xlane.f32.xlu1 %v313_v23  ;;  %311 = vadd.xlane.f32.xlu0 %v310_v24  ;;  %v186_v24 = vld [vmem:[#allocation2 + $0x70] sm:$0xff] }
  0xa5   : > { %v276_v27 = vpop.xlane.xlu1 %275  ;;  %v270_v28 = vpop.xlane.xlu0 %269 }
  0xa6   : > { %v318_v29 = vadd.f32 %v276_v27, %v174_v25  ;;  %v316_v30 = vadd.f32 %v270_v28, %v172_v26 }
  0xa8   : > { %335 = vst.msk [vmem:[#allocation2 + $0x10] sm:$0xff] %vm155_vm0, %v318_v29  ;;  %333 = vst.msk [vmem:[#allocation2] sm:$0xff] %vm155_vm0, %v316_v30 }
  0xa9   : > { %v279_v33 = vpop.xlane.xlu1 %278  ;;  %v273_v34 = vpop.xlane.xlu0 %272 }
  0xaa   : > { %v319_v35 = vadd.f32 %v279_v33, %v175_v31  ;;  %v317_v36 = vadd.f32 %v273_v34, %v173_v32 }
  0xac   : > { %336 = vst.msk [vmem:[#allocation2 + $0x18] sm:$0xff] %vm155_vm0, %v319_v35  ;;  %334 = vst.msk [vmem:[#allocation2 + $0x8] sm:$0xff] %vm155_vm0, %v317_v36 }
  0xad   : > { %v285_v39 = vpop.xlane.xlu1 %284  ;;  %v282_v40 = vpop.xlane.xlu0 %281 }
  0xae   : > { %v321_v41 = vadd.f32 %v285_v39, %v177_v37  ;;  %v320_v42 = vadd.f32 %v282_v40, %v176_v38 }
  0xaf   : > { %v354_v44 = vld [vmem:[#allocation2 + $0x10] sm:$0xff]  ;;  %v352_v45 = vld [vmem:[#allocation2] sm:$0xff] }
  0xb0   : > { %v370_v47 = vmax.f32 %v354_v44, 1.0  ;;  %v368_v48 = vmax.f32 %v352_v45, 1.0  ;;  %338 = vst.msk [vmem:[#allocation2 + $0x28] sm:$0xff] %vm155_vm0, %v321_v41  ;;  %337 = vst.msk [vmem:[#allocation2 + $0x20] sm:$0xff] %vm155_vm0, %v320_v42 }
  0xb1   : > { %v291_v49 = vpop.xlane.xlu1 %290  ;;  %v288_v50 = vpop.xlane.xlu0 %287 }
  0xb2   : > { %580 = vrsqrt.f32 %v370_v47  ;;  %v323_v51 = vadd.f32 %v291_v49, %v179_v43  ;;  %v322_v52 = vadd.f32 %v288_v50, %v178_v46 }
  0xb3   : > { %582 = vrsqrt.f32 %v368_v48  ;;  %v355_v54 = vld [vmem:[#allocation2 + $0x18] sm:$0xff]  ;;  %v353_v55 = vld [vmem:[#allocation2 + $0x8] sm:$0xff] }
  0xb4   : > { %v371_v57 = vmax.f32 %v355_v54, 1.0  ;;  %v369_v58 = vmax.f32 %v353_v55, 1.0  ;;  %340 = vst.msk [vmem:[#allocation2 + $0x38] sm:$0xff] %vm155_vm0, %v323_v51  ;;  %339 = vst.msk [vmem:[#allocation2 + $0x30] sm:$0xff] %vm155_vm0, %v322_v52 }
  0xb5   : > { %v297_v59 = vpop.xlane.xlu1 %296  ;;  %v294_v60 = vpop.xlane.xlu0 %293 }
  0xb6   : > { %584 = vrsqrt.f32 %v371_v57  ;;  %v325_v61 = vadd.f32 %v297_v59, %v181_v53  ;;  %v324_v62 = vadd.f32 %v294_v60, %v180_v56 }
  0xb7   : > { %586 = vrsqrt.f32 %v369_v58  ;;  %v357_v0 = vld [vmem:[#allocation2 + $0x28] sm:$0xff]  ;;  %v356_v1 = vld [vmem:[#allocation2 + $0x20] sm:$0xff] }
  0xb8   : > { %v373_v3 = vmax.f32 %v357_v0, 1.0  ;;  %v372_v4 = vmax.f32 %v356_v1, 1.0  ;;  %342 = vst.msk [vmem:[#allocation2 + $0x48] sm:$0xff] %vm155_vm0, %v325_v61  ;;  %341 = vst.msk [vmem:[#allocation2 + $0x40] sm:$0xff] %vm155_vm0, %v324_v62 }
  0xb9   : > { %v303_v5 = vpop.xlane.xlu1 %302  ;;  %v300_v6 = vpop.xlane.xlu0 %299 }
  0xba   : > { %588 = vrsqrt.f32 %v373_v3  ;;  %v327_v7 = vadd.f32 %v303_v5, %v183_v63  ;;  %v326_v8 = vadd.f32 %v300_v6, %v182_v2 }
  0xbb   : > { %590 = vrsqrt.f32 %v372_v4  ;;  %v359_v10 = vld [vmem:[#allocation2 + $0x38] sm:$0xff]  ;;  %v358_v11 = vld [vmem:[#allocation2 + $0x30] sm:$0xff] }
  0xbc   : > { %v581_v13 = vpop.eup %580  ;;  %v375_v14 = vmax.f32 %v359_v10, 1.0  ;;  %v374_v15 = vmax.f32 %v358_v11, 1.0  ;;  %344 = vst.msk [vmem:[#allocation2 + $0x58] sm:$0xff] %vm155_vm0, %v327_v7  ;;  %343 = vst.msk [vmem:[#allocation2 + $0x50] sm:$0xff] %vm155_vm0, %v326_v8 }
  0xbd   : > { %v583_v16 = vpop.eup %582  ;;  %402 = vst.msk [vmem:[%s720_s19 + $0x10] sm:$0xff] %vm155_vm0, %v581_v13  ;;  %v309_v17 = vpop.xlane.xlu1 %308 }
  0xbe   : > { %v306_v18 = vpop.xlane.xlu0 %305  ;;  %400 = vst.msk [vmem:[%s720_s19] sm:$0xff] %vm155_vm0, %v583_v16  ;;  %592 = vrsqrt.f32 %v375_v14  ;;  %v329_v19 = vadd.f32 %v309_v17, %v185_v9 }
  0xbf   : > { %v328_v20 = vadd.f32 %v306_v18, %v184_v12  ;;  %594 = vrsqrt.f32 %v374_v15  ;;  %v361_v22 = vld [vmem:[#allocation2 + $0x48] sm:$0xff]  ;;  %v360_v23 = vld [vmem:[#allocation2 + $0x40] sm:$0xff] }
  0xc0   : > { %v585_v25 = vpop.eup %584  ;;  %v377_v26 = vmax.f32 %v361_v22, 1.0  ;;  %v376_v27 = vmax.f32 %v360_v23, 1.0  ;;  %346 = vst.msk [vmem:[#allocation2 + $0x68] sm:$0xff] %vm155_vm0, %v329_v19 }
  0xc1   : > { %345 = vst.msk [vmem:[#allocation2 + $0x60] sm:$0xff] %vm155_vm0, %v328_v20  ;;  %v587_v28 = vpop.eup %586  ;;  %403 = vst.msk [vmem:[%s720_s19 + $0x18] sm:$0xff] %vm155_vm0, %v585_v25  ;;  %v315_v29 = vpop.xlane.xlu1 %314 }
  0xc2   : > { %v312_v30 = vpop.xlane.xlu0 %311  ;;  %401 = vst.msk [vmem:[%s720_s19 + $0x8] sm:$0xff] %vm155_vm0, %v587_v28  ;;  %596 = vrsqrt.f32 %v377_v26  ;;  %v331_v31 = vadd.f32 %v315_v29, %v187_v21 }
  0xc3   : > { %v330_v32 = vadd.f32 %v312_v30, %v186_v24  ;;  %598 = vrsqrt.f32 %v376_v27  ;;  %v363_v33 = vld [vmem:[#allocation2 + $0x58] sm:$0xff]  ;;  %v362_v34 = vld [vmem:[#allocation2 + $0x50] sm:$0xff] }
  0xc4   : > { %v589_v35 = vpop.eup %588  ;;  %v379_v36 = vmax.f32 %v363_v33, 1.0  ;;  %v378_v37 = vmax.f32 %v362_v34, 1.0  ;;  %348 = vst.msk [vmem:[#allocation2 + $0x78] sm:$0xff] %vm155_vm0, %v331_v31 }
  0xc5   : > { %347 = vst.msk [vmem:[#allocation2 + $0x70] sm:$0xff] %vm155_vm0, %v330_v32  ;;  %v591_v38 = vpop.eup %590  ;;  %405 = vst.msk [vmem:[%s720_s19 + $0x28] sm:$0xff] %vm155_vm0, %v589_v35 }
  0xc6   : > { %404 = vst.msk [vmem:[%s720_s19 + $0x20] sm:$0xff] %vm155_vm0, %v591_v38  ;;  %600 = vrsqrt.f32 %v379_v36 }
  0xc7   : > { %602 = vrsqrt.f32 %v378_v37  ;;  %v365_v39 = vld [vmem:[#allocation2 + $0x68] sm:$0xff] }
  0xc8   : > { %v364_v40 = vld [vmem:[#allocation2 + $0x60] sm:$0xff]  ;;  %v593_v41 = vpop.eup %592  ;;  %v381_v42 = vmax.f32 %v365_v39, 1.0 }
  0xc9   : > { %v380_v43 = vmax.f32 %v364_v40, 1.0  ;;  %v595_v44 = vpop.eup %594  ;;  %407 = vst.msk [vmem:[%s720_s19 + $0x38] sm:$0xff] %vm155_vm0, %v593_v41 }
  0xca   : > { %406 = vst.msk [vmem:[%s720_s19 + $0x30] sm:$0xff] %vm155_vm0, %v595_v44  ;;  %604 = vrsqrt.f32 %v381_v42 }
  0xcb   : > { %606 = vrsqrt.f32 %v380_v43  ;;  %v367_v45 = vld [vmem:[#allocation2 + $0x78] sm:$0xff] }
  0xcc   : > { %v366_v46 = vld [vmem:[#allocation2 + $0x70] sm:$0xff]  ;;  %v597_v47 = vpop.eup %596  ;;  %v383_v48 = vmax.f32 %v367_v45, 1.0 }
  0xcd   : > { %v382_v49 = vmax.f32 %v366_v46, 1.0  ;;  %v599_v50 = vpop.eup %598  ;;  %409 = vst.msk [vmem:[%s720_s19 + $0x48] sm:$0xff] %vm155_vm0, %v597_v47 }
  0xce   : > { %408 = vst.msk [vmem:[%s720_s19 + $0x40] sm:$0xff] %vm155_vm0, %v599_v50  ;;  %608 = vrsqrt.f32 %v383_v48 }
  0xcf   : > { %610 = vrsqrt.f32 %v382_v49 }
  0xd0   : > { %v601_v51 = vpop.eup %600 }
  0xd1   : > { %v603_v52 = vpop.eup %602  ;;  %411 = vst.msk [vmem:[%s720_s19 + $0x58] sm:$0xff] %vm155_vm0, %v601_v51 }
  0xd2   : > { %410 = vst.msk [vmem:[%s720_s19 + $0x50] sm:$0xff] %vm155_vm0, %v603_v52 }
  0xd4   : > { %v605_v53 = vpop.eup %604 }
  0xd5   : > { %v607_v54 = vpop.eup %606  ;;  %413 = vst.msk [vmem:[%s720_s19 + $0x68] sm:$0xff] %vm155_vm0, %v605_v53 }
  0xd6   : > { %412 = vst.msk [vmem:[%s720_s19 + $0x60] sm:$0xff] %vm155_vm0, %v607_v54 }
  0xd8   : > { %v609_v55 = vpop.eup %608 }
  0xd9   : > { %v611_v56 = vpop.eup %610  ;;  %415 = vst.msk [vmem:[%s720_s19 + $0x78] sm:$0xff] %vm155_vm0, %v609_v55 }
  0xda   : > { %414 = vst.msk [vmem:[%s720_s19 + $0x70] sm:$0xff] %vm155_vm0, %v611_v56 }
  0xdb PF: > { %s11_s8 = sadd.s32 1, %s634_s8   ;;  %s772_s6 = smov %s630_s7 }
  0xdc   : > { %p8_p5 = scmp.ge.s32.totalorder %s11_s8, 4   ;;  %s773_s7 = smov %s775_s9 }
  0xde   :  { %10 = sbr.rel (!%p8_p5) target bundleno = 2 (0x2), region = 62 }

</bundles_post_ra>
